<compile_context>
chip_gen: v6e
topology: v6e:2x2x1
jax: 0.10.0
libtpu: 0.0.40
codegen_flags: <defaults>
</compile_context>

<pallas_src>
import jax
import jax.numpy as jnp
from jax.experimental import pallas as pl
from jax.experimental.pallas import tpu as pltpu

_BN_EPS = 1e-5


def _graph_encoder_kernel(a_ref, x_ref, w_ref, p_ref, g_ref, beta_ref, o_ref):
    """One grid step processes G graphs packed along the row (node) axis.

    a_ref   : (G*N, G*N) bf16  block-diagonal normalized adjacency
    x_ref   : (G*N, H)   bf16  node features (contraction dim NOT padded)
    w_ref   : (H, HP)    bf16  GCN weight, output lanes zero-padded to 128
    p_ref   : (G*N, G*N) f32   block-diagonal per-graph averaging matrix (1/N)
    g_ref   : (1, HP)    f32   BatchNorm gamma (zero-padded lanes)
    beta_ref: (1, HP)    f32   BatchNorm beta  (zero-padded lanes)
    o_ref   : (G*N, HP)  f32
    """
    # GCNConv: h = A_hat @ (X @ W) -- bf16 operands, f32 MXU accumulation.
    # (Bias omitted: a per-feature constant is cancelled exactly by the
    #  train-mode BatchNorm mean subtraction below.)
    xw = jnp.dot(x_ref[...], w_ref[...], preferred_element_type=jnp.float32)
    h = jnp.dot(a_ref[...], xw.astype(jnp.bfloat16),
                preferred_element_type=jnp.float32)

    # Per-graph BatchNorm1d (training mode, biased variance) + tanh.
    # mean/var per graph are obtained with the block-diagonal averaging matrix
    # P (P[i, j] = 1/N iff rows i, j belong to the same graph), which keeps the
    # kernel fully 2-D / 128-lane dense and runs on the otherwise-idle MXU.
    mean = jnp.dot(p_ref[...], h, preferred_element_type=jnp.float32)
    centered = h - mean
    var = jnp.dot(p_ref[...], centered * centered,
                  preferred_element_type=jnp.float32)
    scale = g_ref[...] * jax.lax.rsqrt(var + _BN_EPS)   # rsqrt -> EUP slot
    o_ref[...] = jnp.tanh(centered * scale + beta_ref[...])


def build_gcn_adjacency(edge_index, num_nodes):
    """Dense symmetric-normalized adjacency with self loops (GCNConv semantics).

    Gather/scatter-free: built entirely from one-hot matmuls so the XLA glue in
    front of the kernel stays MXU-friendly (the previous `.at[col,row].add`
    dense scatter under vmap dominated end-to-end wall time).

    edge_index: int32 [2, E], row = source j, col = target i (message j -> i).
    Duplicate edges are summed (matches PyG); degrees are computed on targets
    after adding self loops.
    """
    row, col = edge_index[0], edge_index[1]
    self_loops = jnp.arange(num_nodes, dtype=edge_index.dtype)
    row = jnp.concatenate([row, self_loops])
    col = jnp.concatenate([col, self_loops])
    oh_row = jax.nn.one_hot(row, num_nodes, dtype=jnp.float32)   # (E+N, N)
    oh_col = jax.nn.one_hot(col, num_nodes, dtype=jnp.float32)   # (E+N, N)
    deg = jnp.sum(oh_col, axis=0)                                # in-degree incl. self loops
    dinv = jnp.where(deg > 0.0, jax.lax.rsqrt(deg), 0.0)
    norm = (oh_row @ dinv) * (oh_col @ dinv)                     # d_i^-1/2 * d_j^-1/2 per edge
    # A_hat[i, j] = sum over edges (j -> i) of norm
    return (oh_col * norm[:, None]).T @ oh_row


def graph_encoder_forward(x, edge_index, params, *, num_steps=2):
    """Apply the Graph_Encoder forward to a batch of independent graphs.

    x: [B, N, H] (or [N, H]) float32 node features.
    edge_index: [B, 2, E] (or [2, E]) int32.
    Each graph corresponds to one call of the PyTorch module, so BatchNorm
    statistics are computed per graph over its N nodes.
    """
    single = x.ndim == 2
    if single:
        x = x[None]
        edge_index = edge_index[None]
    b, n, h = x.shape

    # >= 2 "parallel" grid steps so v7x can use both TensorCores; each step
    # packs G graphs into one (G*N)-row matmul for MXU occupancy.
    if num_steps < 1 or b % num_steps != 0:
        num_steps = 1
    g = b // num_steps            # graphs per grid step
    gn = g * n                    # packed rows per grid step

    # Pad only the OUTPUT feature lanes to 128 (unmasked vst); K = H unpadded.
    hp = max(128, ((h + 127) // 128) * 128)
    pad = hp - h

    # Per-graph normalized adjacency, then per-step block-diagonal packing so
    # aggregation over all G graphs is a single (G*N,G*N) @ (G*N,HP) matmul.
    a_hat = jax.vmap(lambda e: build_gcn_adjacency(e, n))(edge_index)     # (B, N, N) f32
    eye_g = jnp.eye(g, dtype=jnp.float32)
    a_bd = jnp.einsum("sgij,gh->sgihj",
                      a_hat.reshape(num_steps, g, n, n), eye_g)
    a_bd = a_bd.reshape(num_steps, gn, gn).astype(jnp.bfloat16)           # (S, GN, GN)

    # Block-diagonal per-graph averaging matrix for the BatchNorm statistics
    # (identical for every step, so its block is never re-fetched).
    p_seg = jnp.kron(eye_g, jnp.full((n, n), 1.0 / n, jnp.float32))       # (GN, GN) f32

    x_flat = x.reshape(b * n, h).astype(jnp.bfloat16)                     # (B*N, H)
    wp = jnp.pad(params["w"], ((0, 0), (0, pad))).astype(jnp.bfloat16)    # (H, HP)
    gp = jnp.pad(params["gamma"], ((0, 0), (0, pad)))                     # (1, HP) f32
    bp = jnp.pad(params["beta"], ((0, 0), (0, pad)))                      # (1, HP) f32

    out = pl.pallas_call(
        _graph_encoder_kernel,
        out_shape=jax.ShapeDtypeStruct((b * n, hp), jnp.float32),
        grid=(num_steps,),
        in_specs=[
            pl.BlockSpec((None, gn, gn), lambda i: (i, 0, 0)),   # A block-diag (per step)
            pl.BlockSpec((gn, h), lambda i: (i, 0)),             # X rows       (per step)
            pl.BlockSpec((h, hp), lambda i: (0, 0)),             # W            (shared)
            pl.BlockSpec((gn, gn), lambda i: (0, 0)),            # P            (shared)
            pl.BlockSpec((1, hp), lambda i: (0, 0)),             # bn gamma
            pl.BlockSpec((1, hp), lambda i: (0, 0)),             # bn beta
        ],
        out_specs=pl.BlockSpec((gn, hp), lambda i: (i, 0)),
        compiler_params=pltpu.CompilerParams(
            dimension_semantics=("parallel",),
        ),
    )(a_bd, x_flat, wp, p_seg, gp, bp)

    out = out[:, :h].reshape(b, n, h)
    if single:
        out = out[0]
    return out


def init_params(key, hidden_size):
    # Uniform(+-1/sqrt(H)) init for the GCN linear weight, standard BatchNorm
    # affine init (gamma=1, beta=0).  The GCNConv bias is not materialized:
    # under train-mode BatchNorm it is mathematically a no-op on the output.
    scale = 1.0 / jnp.sqrt(jnp.float32(hidden_size))
    w = jax.random.uniform(key, (hidden_size, hidden_size), jnp.float32, -scale, scale)
    gamma = jnp.ones((1, hidden_size), jnp.float32)
    beta = jnp.zeros((1, hidden_size), jnp.float32)
    return {"w": w, "gamma": gamma, "beta": beta}


def _reference_forward_bf16(x, a_hat, params):
    """Plain-JAX reference with the same bf16-operand / f32-accumulate math."""
    xw = jnp.dot(x.astype(jnp.bfloat16), params["w"].astype(jnp.bfloat16),
                 preferred_element_type=jnp.float32).astype(jnp.bfloat16)
    h = jnp.dot(a_hat.astype(jnp.bfloat16), xw, preferred_element_type=jnp.float32)
    mean = jnp.mean(h, axis=0, keepdims=True)
    var = jnp.mean((h - mean) ** 2, axis=0, keepdims=True)
    hn = (h - mean) * jax.lax.rsqrt(var + _BN_EPS) * params["gamma"] + params["beta"]
    return jnp.tanh(hn)


def _reference_forward_f32(x, a_hat, params):
    """Full-precision reference of the module forward (single graph)."""
    h = a_hat @ (x @ params["w"])
    mean = jnp.mean(h, axis=0, keepdims=True)
    var = jnp.mean((h - mean) ** 2, axis=0, keepdims=True)
    hn = (h - mean) * jax.lax.rsqrt(var + _BN_EPS) * params["gamma"] + params["beta"]
    return jnp.tanh(hn)


if __name__ == "__main__":
    key = jax.random.PRNGKey(0)
    k_x, k_e, k_p = jax.random.split(key, 3)

    hidden_dim = 16
    is_bi_rnn = True
    hidden_size = hidden_dim * 2 if is_bi_rnn else hidden_dim  # 32
    num_nodes = 16
    num_edges = 40
    num_graphs = 8  # batch of independent graphs; packed 4 per grid step

    x = jax.random.normal(k_x, (num_graphs, num_nodes, hidden_size), jnp.float32)
    edge_index = jax.random.randint(
        k_e, (num_graphs, 2, num_edges), 0, num_nodes, jnp.int32
    )
    params = init_params(k_p, hidden_size)

    out = graph_encoder_forward(x, edge_index, params, num_steps=2)
    jax.block_until_ready(out)
    assert out.shape == (num_graphs, num_nodes, hidden_size)

    # Parity check against a plain-JAX reference using identical bf16/f32 math.
    a_hat = jax.vmap(lambda e: build_gcn_adjacency(e, num_nodes))(edge_index)
    ref_bf16 = jax.vmap(lambda xi, ai: _reference_forward_bf16(xi, ai, params))(x, a_hat)
    assert jnp.allclose(out, ref_bf16, atol=1e-3, rtol=1e-3), (
        float(jnp.max(jnp.abs(out - ref_bf16))))

    # Looser check against the full-f32 module semantics (bf16 matmul rounding).
    ref_f32 = jax.vmap(lambda xi, ai: _reference_forward_f32(xi, ai, params))(x, a_hat)
    assert jnp.allclose(out, ref_f32, atol=5e-2, rtol=5e-2), (
        float(jnp.max(jnp.abs(out - ref_f32))))

    print("KERNEL_OK")
</pallas_src>

<mosaic_0001>
module attributes {stable_mosaic.version = 11 : i64} {
  func.func @_graph_encoder_kernel(%arg0: i32, %arg1: memref<1x64x64xbf16, #tpu.memory_space<vmem>>, %arg2: memref<64x32xbf16, #tpu.memory_space<vmem>>, %arg3: memref<32x128xbf16, #tpu.memory_space<vmem>>, %arg4: memref<64x64xf32, #tpu.memory_space<vmem>>, %arg5: memref<1x128xf32, #tpu.memory_space<vmem>>, %arg6: memref<1x128xf32, #tpu.memory_space<vmem>>, %arg7: memref<64x128xf32, #tpu.memory_space<vmem>>) attributes {dimension_semantics = [#tpu.dimension_semantics<parallel>], iteration_bounds = array<i64: 2>, scalar_prefetch = 0 : i64, scratch_operands = 0 : i64, tpu.core_type = #tpu.core_type<tc>, window_params = [{transform_indices = @transform_0, window_bounds = array<i64: 1, 64, 64>}, {transform_indices = @transform_1, window_bounds = array<i64: 64, 32>}, {pipeline_mode = #tpu.pipeline_mode<synchronous>, transform_indices = @transform_2, window_bounds = array<i64: 32, 128>}, {pipeline_mode = #tpu.pipeline_mode<synchronous>, transform_indices = @transform_3, window_bounds = array<i64: 64, 64>}, {pipeline_mode = #tpu.pipeline_mode<synchronous>, transform_indices = @transform_4, window_bounds = array<i64: 1, 128>}, {pipeline_mode = #tpu.pipeline_mode<synchronous>, transform_indices = @transform_5, window_bounds = array<i64: 1, 128>}, {transform_indices = @transform_6, window_bounds = array<i64: 64, 128>}]} {
    %c0 = arith.constant 0 : index
    %c0_0 = arith.constant 0 : index
    %0 = vector.load %arg2[%c0, %c0_0] : memref<64x32xbf16, #tpu.memory_space<vmem>>, vector<64x32xbf16>
    %c0_1 = arith.constant 0 : index
    %c0_2 = arith.constant 0 : index
    %1 = vector.load %arg3[%c0_1, %c0_2] : memref<32x128xbf16, #tpu.memory_space<vmem>>, vector<32x128xbf16>
    %cst = arith.constant dense<0.000000e+00> : vector<64x128xf32>
    %2 = tpu.matmul %0, %1, %cst {dimension_numbers = #tpu.dot_dimension_numbers<[1], [0], [0], [1], [0, 0, 1, 1], [], []>} : vector<64x32xbf16>, vector<32x128xbf16>, vector<64x128xf32> -> vector<64x128xf32>
    %c0_3 = arith.constant 0 : index
    %c0_4 = arith.constant 0 : index
    %c0_5 = arith.constant 0 : index
    %3 = vector.load %arg1[%c0_3, %c0_4, %c0_5] : memref<1x64x64xbf16, #tpu.memory_space<vmem>>, vector<1x64x64xbf16>
    %4 = vector.shape_cast %3 : vector<1x64x64xbf16> to vector<64x64xbf16>
    %5 = arith.truncf %2 : vector<64x128xf32> to vector<64x128xbf16>
    %cst_6 = arith.constant dense<0.000000e+00> : vector<64x128xf32>
    %6 = tpu.matmul %4, %5, %cst_6 {dimension_numbers = #tpu.dot_dimension_numbers<[1], [0], [0], [1], [0, 0, 1, 1], [], []>} : vector<64x64xbf16>, vector<64x128xbf16>, vector<64x128xf32> -> vector<64x128xf32>
    %c0_7 = arith.constant 0 : index
    %c0_8 = arith.constant 0 : index
    %7 = vector.load %arg4[%c0_7, %c0_8] : memref<64x64xf32, #tpu.memory_space<vmem>>, vector<64x64xf32>
    %cst_9 = arith.constant dense<0.000000e+00> : vector<64x128xf32>
    %8 = tpu.matmul %7, %6, %cst_9 {dimension_numbers = #tpu.dot_dimension_numbers<[1], [0], [0], [1], [0, 0, 1, 1], [], []>} : vector<64x64xf32>, vector<64x128xf32>, vector<64x128xf32> -> vector<64x128xf32>
    %9 = arith.subf %6, %8 : vector<64x128xf32>
    %c0_10 = arith.constant 0 : index
    %c0_11 = arith.constant 0 : index
    %10 = vector.load %arg4[%c0_10, %c0_11] : memref<64x64xf32, #tpu.memory_space<vmem>>, vector<64x64xf32>
    %11 = arith.mulf %9, %9 : vector<64x128xf32>
    %cst_12 = arith.constant dense<0.000000e+00> : vector<64x128xf32>
    %12 = tpu.matmul %10, %11, %cst_12 {dimension_numbers = #tpu.dot_dimension_numbers<[1], [0], [0], [1], [0, 0, 1, 1], [], []>} : vector<64x64xf32>, vector<64x128xf32>, vector<64x128xf32> -> vector<64x128xf32>
    %c0_13 = arith.constant 0 : index
    %c0_14 = arith.constant 0 : index
    %13 = vector.load %arg5[%c0_13, %c0_14] : memref<1x128xf32, #tpu.memory_space<vmem>>, vector<1x128xf32>
    %cst_15 = arith.constant 9.99999974E-6 : f32
    %14 = vector.broadcast %cst_15 : f32 to vector<64x128xf32>
    %15 = arith.addf %12, %14 : vector<64x128xf32>
    %16 = math.rsqrt %15 : vector<64x128xf32>
    %17 = vector.broadcast %13 : vector<1x128xf32> to vector<64x128xf32>
    %18 = arith.mulf %17, %16 : vector<64x128xf32>
    %19 = arith.mulf %9, %18 : vector<64x128xf32>
    %c0_16 = arith.constant 0 : index
    %c0_17 = arith.constant 0 : index
    %20 = vector.load %arg6[%c0_16, %c0_17] : memref<1x128xf32, #tpu.memory_space<vmem>>, vector<1x128xf32>
    %21 = vector.broadcast %20 : vector<1x128xf32> to vector<64x128xf32>
    %22 = arith.addf %19, %21 : vector<64x128xf32>
    %23 = math.tanh %22 : vector<64x128xf32>
    %c0_18 = arith.constant 0 : index
    %c0_19 = arith.constant 0 : index
    %24 = vector.load %arg7[%c0_18, %c0_19] : memref<64x128xf32, #tpu.memory_space<vmem>>, vector<64x128xf32>
    tpu.vector_store %arg7[%c0_18, %c0_19], %23 {strides = array<i32>} : memref<64x128xf32, #tpu.memory_space<vmem>>, vector<64x128xf32>,
    return
  }
  func.func @transform_0(%arg0: i32) -> (i32, i32, i32) {
    %c0_i32 = arith.constant 0 : i32
    %c0_i32_0 = arith.constant 0 : i32
    %c0_i32_1 = arith.constant 0 : i32
    return %arg0, %c0_i32, %c0_i32_0 : i32, i32, i32
  }
  func.func @transform_1(%arg0: i32) -> (i32, i32) {
    %c0_i32 = arith.constant 0 : i32
    %c0_i32_0 = arith.constant 0 : i32
    return %arg0, %c0_i32 : i32, i32
  }
  func.func @transform_2(%arg0: i32) -> (i32, i32) {
    %c0_i32 = arith.constant 0 : i32
    %c0_i32_0 = arith.constant 0 : i32
    %c0_i32_1 = arith.constant 0 : i32
    return %c0_i32, %c0_i32_0 : i32, i32
  }
  func.func @transform_3(%arg0: i32) -> (i32, i32) {
    %c0_i32 = arith.constant 0 : i32
    %c0_i32_0 = arith.constant 0 : i32
    %c0_i32_1 = arith.constant 0 : i32
    return %c0_i32, %c0_i32_0 : i32, i32
  }
  func.func @transform_4(%arg0: i32) -> (i32, i32) {
    %c0_i32 = arith.constant 0 : i32
    %c0_i32_0 = arith.constant 0 : i32
    %c0_i32_1 = arith.constant 0 : i32
    return %c0_i32, %c0_i32_0 : i32, i32
  }
  func.func @transform_5(%arg0: i32) -> (i32, i32) {
    %c0_i32 = arith.constant 0 : i32
    %c0_i32_0 = arith.constant 0 : i32
    %c0_i32_1 = arith.constant 0 : i32
    return %c0_i32, %c0_i32_0 : i32, i32
  }
  func.func @transform_6(%arg0: i32) -> (i32, i32) {
    %c0_i32 = arith.constant 0 : i32
    %c0_i32_0 = arith.constant 0 : i32
    return %arg0, %c0_i32 : i32, i32
  }
}

</mosaic_0001>

<bundles_post_ra>
// kernel: tpu_custom_call.1
= control target key start
LH: loop header
LB: loop body
LE: loop exit
PB: predicated region body
PF: predicated region fallthrough
CT: control target
= control target key end

     0   :  { %11 = vsyncpa [#allocation3], 0  ;;  %s1600_s0 = inlined_call_operand.vmem [shape: bf16[2,64,64], index: 0, kind: input, shape index: {}]   ;;  %s1601_s1 = inlined_call_operand.vmem [shape: bf16[128,32], index: 1, kind: input, shape index: {}]   ;;  %s1602_s2 = inlined_call_operand.vmem [shape: bf16[32,128], index: 2, kind: input, shape index: {}]   ;;  %s1603_s3 = inlined_call_operand.hbm [shape: f32[64,64], index: 3, kind: input, shape index: {}]   ;;  %s1604_s4 = inlined_call_operand.vmem [shape: f32[1,128], index: 4, kind: input, shape index: {}]   ;;  %s1605_s5 = inlined_call_operand.vmem [shape: f32[1,128], index: 5, kind: input, shape index: {}]   ;;  %s1606_s6 = inlined_call_operand.hbm [shape: f32[128,128], index: 6, kind: output, shape index: {}]  }
   0x1   :  { %12 = vsyncpa [#allocation4], 0 }
   0x2   :  { %14 = vsyncpa [#allocation4 + $0x1], 0  ;;  %s1370_s21 = smov 0   ;;  %s1372_s22 = smov 0  }
   0x3   :  { %s1374_s23 = smov 0   ;;  %s1376_s24 = smov 0  }
   0x4 LB: > { %s1391_s25 = sadd.s32 4294967295, %s1327_s24   ;;  %s941_s26 = sadd.s32 4294967294, %s1327_s24   ;;  %s1327_s24 = sphi %s1376_s24, %s1614_s24   ;;  %s1323_s23 = sphi %s1374_s23, %s1613_s23   ;;  %s1319_s22 = sphi %s1372_s22, %s1612_s22   ;;  %s1315_s21 = sphi %s1370_s21, %s1611_s21  }
   0x5   : > { %s1395_s27 = sadd.s32 1, %s1327_s24   ;;  %s163_s28 = sadd.s32 1, %s1323_s23 }
   0x6   : > { %s160_s29 = ssub.s32 %s1327_s24, %s1395_s27  ;;  %p173_p0 = scmp.ne.s32.totalorder %s1323_s23, %s1319_s22 }
   0x7   : > { %p161_p1 = scmp.eq.s32.totalorder %s160_s29, 0  ;;  %p174_p2 = scmp.eq.s32.totalorder %s1391_s25, 1 }
   0x8   : > { %p179_p3 = scmp.ne.s32.totalorder %s1319_s22, %s1315_s21  ;;  %p180_p4 = scmp.eq.s32.totalorder %s941_s26, 1 }
   0x9   : > { %s1406_s30 = scalar_select %p161_p1, %s1323_s23, %s163_s28  }
   0xa   : > { %p1408_p5 = por %p174_p2, %p173_p0  ;;  %p1412_p6 = por %p180_p4, %p179_p3 }
   0xb   : > { %p942_p7 = scmp.ge.s32.totalorder %s1327_s24, 1  ;;  %p187_p8 = scmp.lt.s32.totalorder %s1327_s24, 3 }
   0xc   : > { %s1608_s8 = scalar_select %p1412_p6, 1, 0 }
   0xd   : > { %p1155_p9 = scmp.eq.s32.totalorder %s1391_s25, 0  ;;  %p1419_p10 = pnand %p942_p7, %p187_p8 }
   0xe   : > { %s1329_s10 = smov [#allocation2]  }
   0xf   : > { %s202_s11 = sshll.u32 %s1329_s10, 4  ;;  %p1147_p11 = pneg %p1419_p10  ;;  %s203_s11 = int_to_ptr.vmem [resolvable:$true] %s202_s11 }
  0x10   : > { %s1248_s12 = scalar_lea.vmem %s203_s11, 1024  ;;  %p1256_p3 = scmp.lt.s32.totalorder %s203_s11, %s203_s11 }
  0x11   : > { %p1148_p12 = pnand %p1155_p9, %p1147_p11  ;;  %p1249_p0 = scmp.ne.s32.totalorder %s203_s11, %s1248_s12 }
  0x12   : > { %p1257_p4 = scmp.lt.s32.totalorder %s1248_s12, %s1248_s12 }
  0x13   : > { %p1239_p13 = pneg %p1148_p12 }
  0x14   : > { %p1258_p6 = por %p1257_p4, %p1256_p3 }
  0x15   : > { %p1251_p1 = pnand %p1249_p0, %p1239_p13 }
  0x17   : > { %p1252_p2 = pneg %p1251_p1 }
  0x19   : > { %p1259_p7 = pnand %p1258_p6, %p1252_p2 }
  0x1b   : > { %1262 = shalt.err (!%p1259_p7)
}
  0x1c   : > { %s1330_s13 = smov 128   ;;  %s1331_s14 = smov 8  }
  0x1d   : > { %1150 = dma.hbm_to_vmem [thread:$0]  (!%p1148_p12), %s1603_s3, 1024, %s203_s11, [#allocation3], %s1330_s13, %s1330_s13, %s1331_s14  }
  0x1e   : > { %241 = sbr.rel (%p1419_p10) target bundleno = 967 (0x3c7), region = 44 }
  0x23   : > { %1306 = dma.done.wait (%p1155_p9), [#allocation3], 1024  }
  0x24   : > { %1308 = vsyncadd (%p1155_p9), [#allocation3], 4294966272  ;;  %s950_s17 = sshll.u32 %s1391_s25, 3  ;;  %v1195_v0 = vld [vmem:[%s1602_s2 + $0x8] sm:$0xff]   ;;  %v1196_v1 = vld [vmem:[%s1602_s2] sm:$0xff]   ;;  %vm333_vm0 = vcmask 261120  }
  0x25   : > { %p282_p8 = scmp.lt.s32.totalorder %s950_s17, 15  ;;  %1041 = vmatprep.subr.bf16.mxu0 %v1195_v0  ;;  %p276_p6 = scmp.lt.s32.totalorder %s1391_s25, 1  ;;  %vm443_vm1 = vcmask 523264   ;;  %v521_v22 = vld [vmem:[#allocation2] sm:$0xff]  ;;  %v523_v23 = vld [vmem:[#allocation2 + $0x10] sm:$0xff]  ;;  %v1463_v32 = vld [vmem:[#allocation2 + $0x8] sm:$0xff] }
  0x26   : > { %1042 = vmatpush3.bf16.msra.mxu0 %v1195_v0  ;;  %v1470_v33 = vld [vmem:[#allocation2 + $0x18] sm:$0xff]  ;;  %v1472_v34 = vld [vmem:[#allocation2 + $0x20] sm:$0xff]  ;;  %v1478_v35 = vld [vmem:[#allocation2 + $0x28] sm:$0xff]  ;;  %s273_s20 = sand.u32 1, %s1319_s22   ;;  %s994_s29 = sshll.u32 %s1391_s25, 10 }
  0x27   : > { %s1616_s17 = smov (!%p282_p8, %s950_s17), 15  ;;  %1043 = vmatprep.subr.bf16.mxu0 %v1196_v1  ;;  %v1480_v36 = vld [vmem:[#allocation2 + $0x30] sm:$0xff]  ;;  %v1486_v37 = vld [vmem:[#allocation2 + $0x38] sm:$0xff]  ;;  %s1560_s13 = scalar_lea.sflag [#allocation4], %s273_s20 }
  0x28   : > { %s951_s18 = sshll.u32 %s1616_s17, 2  ;;  %s1332_s14 = smov [#allocation5]  }
  0x29   : > { %s285_s26 = scalar_lea.vmem %s1601_s1, %s951_s18 }
  0x2a   : > { %v1197_v2 = vld [vmem:[%s285_s26] sm:$0xff]   ;;  %v1198_v3 = vld [vmem:[%s285_s26 + $0x8] sm:$0xff]   ;;  %1044 = vmatpush3.bf16.msra.mxu0 %v1196_v1  ;;  %v1199_v4 = vld [vmem:[%s285_s26 + $0x10] sm:$0xff]   ;;  %s277_s11 = scalar_select %p276_p6, %s1391_s25, 1 }
  0x2b   : > { %1045 = vmatprep.mubr.msk.bf16.mxu0 %vm333_vm0, %v1197_v2  ;;  %v1200_v5 = vld [vmem:[%s285_s26 + $0x18] sm:$0xff]   ;;  %s947_s26 = sshll.u32 %s273_s20, 6 }
  0x2c   : > { %s993_s12 = sshll.u32 %s277_s11, 5  ;;  %s275_s28 = scalar_lea.vmem [#allocation5], %s947_s26 }
  0x2d   : > { %1046 = vmatmul.mubr.msk.bf16.vlgmr.msra.gmra.mxu0 %vm333_vm0, %v1198_v3  ;;  %s280_s15 = scalar_lea.vmem %s1600_s0, %s993_s12  ;;  %s855_s9 = sshll.u32 %s275_s28, 4  ;;  %s1558_s9 = int_to_ptr.vmem [resolvable:$true] %s855_s9 }
  0x2e   : > { %1049 = vmatprep.mubr.msk.bf16.mxu0 %vm333_vm0, %v1199_v4  ;;  %v1201_v6 = vld [vmem:[%s280_s15] sm:$0xff]   ;;  %v1202_v19 = vld [vmem:[%s280_s15 + $0x8] sm:$0xff]   ;;  %v1203_v20 = vld [vmem:[%s280_s15 + $0x10] sm:$0xff]   ;;  %s1556_s12 = scalar_lea.hbm %s1606_s6, %s994_s29  ;;  %s1263_s25 = scalar_lea.vmem %s1558_s9, 1024 }
  0x2f   : > { %1061 = vmatprep.mubr.msk.bf16.mxu1 %vm443_vm1, %v1201_v6  ;;  %v1204_v21 = vld [vmem:[%s280_s15 + $0x18] sm:$0xff]   ;;  %p1264_p9 = scmp.ne.s32.totalorder %s1558_s9, %s1263_s25  ;;  %s1267_s15 = sshll.u32 %s1332_s14, 4  ;;  %s1268_s15 = int_to_ptr.vmem [resolvable:$false] %s1267_s15 }
  0x30   : > { %s1269_s16 = scalar_lea.vmem %s1268_s15, 2048  ;;  %p1270_p12 = scmp.lt.s32.totalorder %s1558_s9, %s1268_s15 }
  0x31   : > { %p1265_p10 = pnand %p1264_p9, %p1408_p5  ;;  %p1271_p13 = scmp.lt.s32.totalorder %s1269_s16, %s1263_s25 }
  0x33   : > { %p1266_p11 = pneg %p1265_p10  ;;  %p1272_p0 = por %p1271_p13, %p1270_p12 }
  0x35   : > { %1050 = vmatmul.mubr.msk.bf16.gmra.mxu0 %vm333_vm0, %v1200_v5  ;;  %p1273_p1 = pnand %p1272_p0, %p1266_p11 }
  0x36   : > { %1085 = vmatprep.mubr.msk.f32.mxu0 %vm443_vm1, %v521_v22 }
  0xed   : > { %v1047_v7 = vpop.f32.mrf.mxu0 }
  0xef   : > { %v380_v8 = vpop.f32.mrf.mxu0 }
  0xf1   : > { %v1048_v9 = vpop.f32.mrf.mxu0 }
  0xf2   : > { %v420_v17 = vpack.c.bf16 %v1048_v9, %v1047_v7 }
  0xf3   : > { %v383_v10 = vpop.f32.mrf.mxu0 }
  0xf4   : > { %v419_v18 = vpack.c.bf16 %v383_v10, %v380_v8 }
  0xf5   : > { %v1051_v11 = vpop.f32.mrf.mxu0 }
  0xf7   : > { %v396_v12 = vpop.f32.mrf.mxu0 }
  0xf9   : > { %v1052_v13 = vpop.f32.mrf.mxu0 }
  0xfa   : > { %v422_v14 = vpack.c.bf16 %v1052_v13, %v1051_v11 }
  0xfb   : > { %v399_v15 = vpop.f32.mrf.mxu0 }
  0xfc   : > { %v421_v16 = vpack.c.bf16 %v399_v15, %v396_v12  ;;  %1053 = vmatprep.subr.bf16.mxu1 %v422_v14 }
  0xfd   : > { %1054 = vmatpush3.bf16.msra.mxu1 %v422_v14  ;;  %v986_v14 = vld [vmem:[%s1604_s4] ss:$0 sm:$0xff] }
  0xfe   : > { %1055 = vmatprep.subr.bf16.mxu1 %v421_v16 }
 0x101   : > { %1056 = vmatpush3.bf16.msra.mxu1 %v421_v16 }
 0x102   : > { %1057 = vmatprep.subr.bf16.mxu1 %v420_v17 }
 0x105   : > { %1058 = vmatpush3.bf16.msra.mxu1 %v420_v17 }
 0x106   : > { %1059 = vmatprep.subr.bf16.mxu1 %v419_v18 }
 0x109   : > { %1060 = vmatpush3.bf16.msra.mxu1 %v419_v18 }
 0x10c   : > { %1062 = vmatmul.mubr.msk.bf16.vlgmr.msra.gmra.mxu1 %vm443_vm1, %v1202_v19  ;;  %v987_v19 = vld [vmem:[%s1605_s5] ss:$0 sm:$0xff] }
 0x10d   : > { %1065 = vmatprep.mubr.msk.bf16.mxu1 %vm443_vm1, %v1203_v20 }
 0x114   : > { %1066 = vmatmul.mubr.msk.bf16.gmra.mxu1 %vm443_vm1, %v1204_v21 }
 0x115   : > { %1116 = vmatprep.mubr.msk.f32.mxu1 %vm443_vm1, %v523_v23 }
 0x1cc   : > { %v1063_v24 = vpop.f32.mrf.mxu1 }
 0x1ce   : > { %v1457_v25 = vpop.f32.mrf.mxu1 }
 0x1d0   : > { %v1064_v26 = vpop.f32.mrf.mxu1 }
 0x1d2   : > { %v1459_v27 = vpop.f32.mrf.mxu1 }
 0x1d4   : > { %v1067_v28 = vpop.f32.mrf.mxu1 }
 0x1d6   : > { %v506_v29 = vpop.f32.mrf.mxu1 }
 0x1d8   : > { %v1068_v30 = vpop.f32.mrf.mxu1 }
 0x1d9   : > { %1069 = vmatprep.subr.mxu0 %v1068_v30 }
 0x1da   : > { %1070 = vmatpush3.msra.mxu0 %v1068_v30  ;;  %v509_v31 = vpop.f32.mrf.mxu1 }
 0x1db   : > { %1071 = vmatprep.subr.mxu0 %v1067_v28 }
 0x1dc   : > { %1072 = vmatpush3.msra.mxu0 %v1067_v28 }
 0x1dd   : > { %1073 = vmatprep.subr.mxu0 %v509_v31 }
 0x1de   : > { %1074 = vmatpush3.msra.mxu0 %v509_v31 }
 0x1df   : > { %1075 = vmatprep.subr.mxu0 %v506_v29 }
 0x1e0   : > { %1076 = vmatpush3.msra.mxu0 %v506_v29 }
 0x1e1   : > { %1077 = vmatprep.subr.mxu0 %v1064_v26 }
 0x1e2   : > { %1078 = vmatpush3.msra.mxu0 %v1064_v26 }
 0x1e3   : > { %1079 = vmatprep.subr.mxu0 %v1063_v24 }
 0x1e4   : > { %1080 = vmatpush3.msra.mxu0 %v1063_v24 }
 0x1e5   : > { %1081 = vmatprep.subr.mxu0 %v1459_v27 }
 0x1e6   : > { %1082 = vmatpush3.msra.mxu0 %v1459_v27 }
 0x1e7   : > { %1083 = vmatprep.subr.mxu0 %v1457_v25 }
 0x1e8   : > { %1084 = vmatpush3.msra.mxu0 %v1457_v25 }
 0x1e9   : > { %1086 = vmatmul.mubr.msk.f32.vlgmr.msra.gmra.mxu0 %vm443_vm1, %v1463_v32 }
 0x1ea   : > { %1088 = vmatprep.mubr.msk.f32.mxu0 %vm443_vm1, %v523_v23 }
 0x1ed   : > { %1089 = vmatmul.mubr.msk.f32.gmra.mxu0 %vm443_vm1, %v1470_v33 }
 0x1ee   : > { %1091 = vmatprep.mubr.msk.f32.mxu0 %vm443_vm1, %v1472_v34 }
 0x1f1   : > { %1092 = vmatmul.mubr.msk.f32.gmra.mxu0 %vm443_vm1, %v1478_v35 }
 0x1f2   : > { %1094 = vmatprep.mubr.msk.f32.mxu0 %vm443_vm1, %v1480_v36 }
 0x1f5   : > { %1095 = vmatmul.mubr.msk.f32.gmra.mxu0 %vm443_vm1, %v1486_v37 }
 0x1f6   : > { %1113 = vmatprep.mubr.msk.f32.mxu0 %vm443_vm1, %v521_v22 }
 0x2a9   : > { %v1087_v38 = vpop.f32.mrf.mxu0 }
 0x2aa   : > { %v1512_v56 = vsub.f32 %v1459_v27, %v1087_v38 }
 0x2ab   : > { %v619_v39 = vpop.f32.mrf.mxu0 }
 0x2ac   : > { %v1517_v58 = vsub.f32 %v1457_v25, %v619_v39  ;;  %v667_v60 = vmul.f32 %v1512_v56, %v1512_v56 }
 0x2ad   : > { %v1090_v40 = vpop.f32.mrf.mxu0 }
 0x2ae   : > { %v1503_v52 = vsub.f32 %v1064_v26, %v1090_v40  ;;  %v666_v61 = vmul.f32 %v1517_v58, %v1517_v58 }
 0x2af   : > { %v629_v41 = vpop.f32.mrf.mxu0 }
 0x2b0   : > { %v1507_v54 = vsub.f32 %v1063_v24, %v629_v41  ;;  %v669_v57 = vmul.f32 %v1503_v52, %v1503_v52 }
 0x2b1   : > { %v1093_v42 = vpop.f32.mrf.mxu0 }
 0x2b2   : > { %v1493_v47 = vsub.f32 %v509_v31, %v1093_v42  ;;  %v668_v59 = vmul.f32 %v1507_v54, %v1507_v54 }
 0x2b3   : > { %v639_v43 = vpop.f32.mrf.mxu0 }
 0x2b4   : > { %v1499_v50 = vsub.f32 %v506_v29, %v639_v43  ;;  %v671_v53 = vmul.f32 %v1493_v47, %v1493_v47 }
 0x2b5   : > { %v1096_v44 = vpop.f32.mrf.mxu0 }
 0x2b6   : > { %v1491_v45 = vsub.f32 %v1068_v30, %v1096_v44  ;;  %v670_v55 = vmul.f32 %v1499_v50, %v1499_v50 }
 0x2b7   : > { %v649_v46 = vpop.f32.mrf.mxu0 }
 0x2b8   : > { %v673_v48 = vmul.f32 %v1491_v45, %v1491_v45  ;;  %v1497_v49 = vsub.f32 %v1067_v28, %v649_v46 }
 0x2ba   : > { %v672_v51 = vmul.f32 %v1497_v49, %v1497_v49  ;;  %1097 = vmatprep.subr.mxu0 %v673_v48  ;;  %1125 = vmatprep.subr.mxu1 %v673_v48 }
 0x2bb   : > { %1098 = vmatpush3.msra.mxu0 %v673_v48  ;;  %1133 = vmatpush3.msra.mxu1 %v673_v48 }
 0x2bc   : > { %1099 = vmatprep.subr.mxu0 %v672_v51  ;;  %1126 = vmatprep.subr.mxu1 %v672_v51 }
 0x2bd   : > { %1100 = vmatpush3.msra.mxu0 %v672_v51  ;;  %1134 = vmatpush3.msra.mxu1 %v672_v51 }
 0x2be   : > { %1101 = vmatprep.subr.mxu0 %v671_v53  ;;  %1127 = vmatprep.subr.mxu1 %v671_v53 }
 0x2bf   : > { %1102 = vmatpush3.msra.mxu0 %v671_v53  ;;  %1135 = vmatpush3.msra.mxu1 %v671_v53 }
 0x2c0   : > { %1103 = vmatprep.subr.mxu0 %v670_v55  ;;  %1128 = vmatprep.subr.mxu1 %v670_v55 }
 0x2c1   : > { %1104 = vmatpush3.msra.mxu0 %v670_v55  ;;  %1136 = vmatpush3.msra.mxu1 %v670_v55 }
 0x2c2   : > { %1105 = vmatprep.subr.mxu0 %v669_v57  ;;  %1129 = vmatprep.subr.mxu1 %v669_v57 }
 0x2c3   : > { %1106 = vmatpush3.msra.mxu0 %v669_v57  ;;  %1137 = vmatpush3.msra.mxu1 %v669_v57 }
 0x2c4   : > { %1107 = vmatprep.subr.mxu0 %v668_v59  ;;  %1130 = vmatprep.subr.mxu1 %v668_v59 }
 0x2c5   : > { %1108 = vmatpush3.msra.mxu0 %v668_v59  ;;  %1138 = vmatpush3.msra.mxu1 %v668_v59 }
 0x2c6   : > { %1109 = vmatprep.subr.mxu0 %v667_v60  ;;  %1131 = vmatprep.subr.mxu1 %v667_v60 }
 0x2c7   : > { %1110 = vmatpush3.msra.mxu0 %v667_v60  ;;  %1139 = vmatpush3.msra.mxu1 %v667_v60 }
 0x2c8   : > { %1111 = vmatprep.subr.mxu0 %v666_v61  ;;  %1132 = vmatprep.subr.mxu1 %v666_v61 }
 0x2c9   : > { %1112 = vmatpush3.msra.mxu0 %v666_v61  ;;  %1140 = vmatpush3.msra.mxu1 %v666_v61 }
 0x2ca   : > { %1114 = vmatmul.mubr.msk.f32.vlgmr.msra.gmra.mxu0 %vm443_vm1, %v1463_v32  ;;  %1117 = vmatmul.mubr.msk.f32.vlgmr.msra.gmra.mxu1 %vm443_vm1, %v1470_v33 }
 0x2cb   : > { %1119 = vmatprep.mubr.msk.f32.mxu1 %vm443_vm1, %v1472_v34 }
 0x2ce   : > { %1120 = vmatmul.mubr.msk.f32.gmra.mxu1 %vm443_vm1, %v1478_v35 }
 0x2cf   : > { %1122 = vmatprep.mubr.msk.f32.mxu1 %vm443_vm1, %v1480_v36 }
 0x2d2   : > { %1123 = vmatmul.mubr.msk.f32.gmra.mxu1 %vm443_vm1, %v1486_v37 }
 0x38a   : > { %v1115_v62 = vpop.f32.mrf.mxu0  ;;  %v1118_v63 = vpop.f32.mrf.mxu1 }
 0x38b   : > { %v747_v0 = vadd.f32 1e-05, %v1115_v62  ;;  %v757_v1 = vadd.f32 1e-05, %v1118_v63 }
 0x38c   : > { %v741_v2 = vpop.f32.mrf.mxu0  ;;  %v751_v3 = vpop.f32.mrf.mxu1 }
 0x38d   : > { %1205 = vrsqrt.f32 %v747_v0  ;;  %v742_v4 = vadd.f32 1e-05, %v741_v2  ;;  %v752_v5 = vadd.f32 1e-05, %v751_v3 }
 0x38e   : > { %1207 = vrsqrt.f32 %v757_v1  ;;  %v1121_v6 = vpop.f32.mrf.mxu1 }
 0x38f   : > { %1209 = vrsqrt.f32 %v742_v4  ;;  %v767_v7 = vadd.f32 1e-05, %v1121_v6 }
 0x390   : > { %1211 = vrsqrt.f32 %v752_v5  ;;  %v761_v8 = vpop.f32.mrf.mxu1 }
 0x391   : > { %1213 = vrsqrt.f32 %v767_v7  ;;  %v762_v9 = vadd.f32 1e-05, %v761_v8 }
 0x392   : > { %v1124_v10 = vpop.f32.mrf.mxu1 }
 0x393   : > { %1215 = vrsqrt.f32 %v762_v9  ;;  %v777_v11 = vadd.f32 1e-05, %v1124_v10 }
 0x394   : > { %v771_v12 = vpop.f32.mrf.mxu1 }
 0x395   : > { %1217 = vrsqrt.f32 %v777_v11  ;;  %v772_v13 = vadd.f32 1e-05, %v771_v12 }
 0x397   : > { %1219 = vrsqrt.f32 %v772_v13 }
 0x39a   : > { %v1206_v15 = vpop.eup %1205 }
 0x39b   : > { %v1208_v16 = vpop.eup %1207  ;;  %v795_v17 = vmul.f32 %v1206_v15, %v986_v14 }
 0x39c   : > { %v1210_v18 = vpop.eup %1209  ;;  %v797_v20 = vmul.f32 %v1208_v16, %v986_v14 }
 0x39d   : > { %v1212_v21 = vpop.eup %1211  ;;  %v803_v22 = vmul.f32 %v795_v17, %v1512_v56  ;;  %v794_v23 = vmul.f32 %v1210_v18, %v986_v14 }
 0x39e   : > { %v1214_v24 = vpop.eup %1213  ;;  %v805_v25 = vmul.f32 %v797_v20, %v1503_v52  ;;  %v796_v26 = vmul.f32 %v1212_v21, %v986_v14 }
 0x39f   : > { %v818_v27 = vadd.f32 %v987_v19, %v803_v22  ;;  %v802_v28 = vmul.f32 %v794_v23, %v1517_v58  ;;  %v799_v29 = vmul.f32 %v1214_v24, %v986_v14 }
 0x3a0   : > { %v1216_v30 = vpop.eup %1215  ;;  %v820_v31 = vadd.f32 %v987_v19, %v805_v25  ;;  %v804_v32 = vmul.f32 %v796_v26, %v1507_v54 }
 0x3a1   : > { %1221 = vtanh.f32 %v818_v27  ;;  %v817_v33 = vadd.f32 %v987_v19, %v802_v28  ;;  %v807_v34 = vmul.f32 %v799_v29, %v1493_v47  ;;  %v798_v35 = vmul.f32 %v1216_v30, %v986_v14 }
 0x3a2   : > { %v1218_v36 = vpop.eup %1217  ;;  %1223 = vtanh.f32 %v820_v31  ;;  %v819_v37 = vadd.f32 %v987_v19, %v804_v32 }
 0x3a3   : > { %1225 = vtanh.f32 %v817_v33  ;;  %v822_v38 = vadd.f32 %v987_v19, %v807_v34  ;;  %v806_v39 = vmul.f32 %v798_v35, %v1499_v50  ;;  %v801_v40 = vmul.f32 %v1218_v36, %v986_v14 }
 0x3a4   : > { %v1220_v41 = vpop.eup %1219  ;;  %1227 = vtanh.f32 %v819_v37 }
 0x3a5   : > { %1229 = vtanh.f32 %v822_v38  ;;  %v821_v42 = vadd.f32 %v987_v19, %v806_v39  ;;  %v809_v43 = vmul.f32 %v801_v40, %v1491_v45  ;;  %v800_v44 = vmul.f32 %v1220_v41, %v986_v14 }
 0x3a7   : > { %1231 = vtanh.f32 %v821_v42  ;;  %v824_v46 = vadd.f32 %v987_v19, %v809_v43  ;;  %v808_v47 = vmul.f32 %v800_v44, %v1497_v49 }
 0x3a9   : > { %1233 = vtanh.f32 %v824_v46  ;;  %v823_v48 = vadd.f32 %v987_v19, %v808_v47 }
 0x3ab   : > { %1235 = vtanh.f32 %v823_v48 }
 0x3ae   : > { %v1222_v51 = vpop.eup %1221 }
 0x3af   : > { %v1224_v50 = vpop.eup %1223  ;;  %834 = vst [vmem:[%s275_s28 + $0x8] sm:$0xff] %v1222_v51 }
 0x3b0   : > { %v1226_v52 = vpop.eup %1225  ;;  %836 = vst [vmem:[%s275_s28 + $0x18] sm:$0xff] %v1224_v50 }
 0x3b1   : > { %v1228_v53 = vpop.eup %1227  ;;  %833 = vst [vmem:[%s275_s28] sm:$0xff] %v1226_v52 }
 0x3b2   : > { %v1230_v45 = vpop.eup %1229  ;;  %835 = vst [vmem:[%s275_s28 + $0x10] sm:$0xff] %v1228_v53 }
 0x3b3   : > { %838 = vst [vmem:[%s275_s28 + $0x28] sm:$0xff] %v1230_v45 }
 0x3b4   : > { %v1232_v49 = vpop.eup %1231 }
 0x3b5   : > { %837 = vst [vmem:[%s275_s28 + $0x20] sm:$0xff] %v1232_v49 }
 0x3b6   : > { %v1234_v54 = vpop.eup %1233 }
 0x3b7   : > { %840 = vst [vmem:[%s275_s28 + $0x38] sm:$0xff] %v1234_v54 }
 0x3b8   : > { %v1236_v55 = vpop.eup %1235 }
 0x3b9   : > { %839 = vst [vmem:[%s275_s28 + $0x30] sm:$0xff] %v1236_v55 }
 0x3ba   : > { %1276 = shalt.err (!%p1273_p1)
}
 0x3bb   : > { %s1277_s17 = scalar_lea.hbm %s1556_s12, 1024  ;;  %s1281_s20 = scalar_lea.hbm %s1606_s6, 2048 }
 0x3bc   : > { %p1278_p2 = scmp.ne.s32.totalorder %s1556_s12, %s1277_s17  ;;  %p1282_p7 = scmp.lt.s32.totalorder %s1556_s12, %s1606_s6 }
 0x3bd   : > { %p1283_p8 = scmp.lt.s32.totalorder %s1281_s20, %s1277_s17 }
 0x3be   : > { %p1279_p3 = pnand %p1278_p2, %p1408_p5 }
 0x3bf   : > { %p1284_p6 = por %p1283_p8, %p1282_p7 }
 0x3c0   : > { %p1280_p4 = pneg %p1279_p3 }
 0x3c2   : > { %p1285_p9 = pnand %p1284_p6, %p1280_p4 }
 0x3c4   : > { %1288 = shalt.err (!%p1285_p9)
}
 0x3c5   : > { %s1333_s29 = smov 128   ;;  %s1334_s10 = smov 8  }
 0x3c6   : > { %1145 = dma.vmem_to_hbm [thread:$0]  (%p1408_p5), %s1558_s9, 1024, %s1556_s12, %s1560_s13, %s1333_s29, %s1333_s29, %s1334_s10  }
 0x3c7 PF: > { %p1157_p10 = scmp.ge.s32.totalorder %s1327_s24, 2  ;;  %s870_s11 = sand.u32 1, %s1315_s21  }
 0x3c8   : > { %p1610_p11 = scmp.ne.s32.totalorder %s1608_s8, 0  ;;  %s871_s25 = scalar_lea.sflag [#allocation4], %s870_s11 }
 0x3ca   : > { %p1152_p12 = pnand %p1157_p10, %p1610_p11 }
 0x3cc   : > { %p1153_p13 = pneg %p1152_p12 }
 0x3ce   : > { %1310 = dma.done.wait (%p1153_p13), %s871_s25, 1024  }
 0x3cf   : > { %1312 = vsyncadd (%p1153_p13), %s871_s25, 4294966272  ;;  %p17_p0 = scmp.ge.s32.totalorder %s1395_s27, 4   ;;  %s1611_s21 = smov %s1319_s22 }
 0x3d0   : > { %s1612_s22 = smov %s1323_s23  ;;  %s1613_s23 = smov %s1406_s30 }
 0x3d1   : > { %s1614_s24 = smov %s1395_s27  ;;  %19 = sbr.rel (!%p17_p0) target bundleno = 4 (0x4), region = 87 }
 0x3d6   :  { %876 = vsyncpa [#allocation3], 1 }
 0x3d7   :  { %878 = vsyncpa [#allocation3 + $0x1], 1 }
 0x3d8   :  { %879 = vsyncpa [#allocation4], 1 }
 0x3d9   :  { %881 = vsyncpa [#allocation4 + $0x1], 1 }

</bundles_post_ra>
